<compile_context>
chip_gen: v6e
topology: v6e:2x2x1
jax: 0.10.0
libtpu: 0.0.40
codegen_flags: <defaults>
</compile_context>

<pallas_src>
import functools

import jax
import jax.numpy as jnp
from jax.experimental import pallas as pl
from jax.experimental.pallas import tpu as pltpu


def _round_up(a: int, m: int) -> int:
    return ((a + m - 1) // m) * m


# ---------------------------------------------------------------------------
# Kernels.  Each computes one (tm, tn) tile of  relu(x) @ W^T + b  from
# (tm, tk) x tiles and (tk, tn) pre-transposed weight tiles.
# ---------------------------------------------------------------------------

def _single_step_kernel(x_ref, w_ref, b_ref, o_ref, *, compute_dtype):
    """K fits in one tile: no accumulator, bias added inline."""
    y = jnp.maximum(x_ref[...], 0).astype(compute_dtype)
    acc = jnp.dot(y, w_ref[...], preferred_element_type=jnp.float32)
    o_ref[...] = (acc + b_ref[...]).astype(o_ref.dtype)


def _acc_into_out_kernel(x_ref, w_ref, b_ref, o_ref, *, compute_dtype):
    """Multi-step K, f32 output: accumulate directly into the resident output
    tile (bias is the k==0 init), so no VMEM scratch and no epilogue copy."""
    k = pl.program_id(2)

    @pl.when(k == 0)
    def _():
        o_ref[...] = jnp.broadcast_to(b_ref[...], o_ref.shape).astype(o_ref.dtype)

    y = jnp.maximum(x_ref[...], 0).astype(compute_dtype)
    o_ref[...] += jnp.dot(y, w_ref[...], preferred_element_type=jnp.float32)


def _acc_scratch_kernel(x_ref, w_ref, b_ref, o_ref, acc_ref, *, compute_dtype):
    """Multi-step K, non-f32 output: f32 accumulator scratch + epilogue."""
    k = pl.program_id(2)

    @pl.when(k == 0)
    def _():
        acc_ref[...] = jnp.zeros_like(acc_ref)

    y = jnp.maximum(x_ref[...], 0).astype(compute_dtype)
    acc_ref[...] += jnp.dot(y, w_ref[...], preferred_element_type=jnp.float32)

    @pl.when(k == pl.num_programs(2) - 1)
    def _():
        o_ref[...] = (acc_ref[...] + b_ref[...]).astype(o_ref.dtype)


# ---------------------------------------------------------------------------
# Module wrapper: prepares (pads / casts / transposes) the static parameters
# exactly once and keeps them cached.
# ---------------------------------------------------------------------------

class LateFusionPallas:
    """relu(x) @ weight.T + bias.

    weight: (output_dim, input_dim)   -- native PyTorch nn.Linear layout
    bias:   (output_dim,)
    """

    def __init__(self, weight, bias, *, tn=512, tk=1024,
                 compute_dtype=jnp.bfloat16):
        N, K = weight.shape
        assert bias.shape == (N,)
        self.N, self.K = N, K
        self.compute_dtype = jnp.dtype(compute_dtype)

        tn = min(_round_up(tn, 128), _round_up(N, 128))
        tk = min(_round_up(tk, 128), _round_up(K, 128))
        Np, Kp = _round_up(N, tn), _round_up(K, tk)
        self.tn, self.tk, self.Np, self.Kp = tn, tk, Np, Kp

        # One-time weight prep (cached): cast -> pad -> transpose to (Kp, Np).
        w = weight.astype(self.compute_dtype)
        if Np != N or Kp != K:
            w = jnp.pad(w, ((0, Np - N), (0, Kp - K)))
        self.wT = jnp.asarray(jnp.transpose(w))           # (Kp, Np)

        b = bias.astype(jnp.float32)
        if Np != N:
            b = jnp.pad(b, (0, Np - N))
        self.b = b.reshape(1, Np)

    def __call__(self, x, *, tm=512):
        B, K = x.shape
        assert K == self.K, f"expected input_dim={self.K}, got {K}"
        out_dtype = x.dtype

        # Sublane alignment: 8 rows for f32 tiles, 16 for packed bf16 tiles.
        x_sub = 8 if self.compute_dtype.itemsize == 4 else 16
        o_sub = 8 if jnp.dtype(out_dtype).itemsize == 4 else 16
        sub = max(x_sub, o_sub)
        tm = min(_round_up(tm, sub), _round_up(B, sub))
        Mp = _round_up(B, tm)

        tn, tk = self.tn, self.tk
        Np, Kp = self.Np, self.Kp

        # v7x megacore: make sure the parallel (M, N) grid has >= 2 tiles so
        # both TensorCores get work (only possible when N > 128).
        if Mp // tm == 1 and Np // tn == 1 and Np >= 256:
            tn = 128

        grid = (Mp // tm, Np // tn, Kp // tk)
        nk = grid[2]

        # bf16 operands are fed from HBM: cast x once (fused with the pad)
        # instead of loading f32 and casting per tile inside the kernel.
        xk = x if x.dtype == self.compute_dtype else x.astype(self.compute_dtype)
        if Mp != B or Kp != K:
            xk = jnp.pad(xk, ((0, Mp - B), (0, Kp - K)))

        # Pick the cheapest kernel variant.
        if nk == 1:
            kernel = functools.partial(_single_step_kernel,
                                       compute_dtype=self.compute_dtype)
            scratch = []
        elif jnp.dtype(out_dtype) == jnp.dtype(jnp.float32):
            kernel = functools.partial(_acc_into_out_kernel,
                                       compute_dtype=self.compute_dtype)
            scratch = []
        else:
            kernel = functools.partial(_acc_scratch_kernel,
                                       compute_dtype=self.compute_dtype)
            scratch = [pltpu.VMEM((tm, tn), jnp.float32)]

        # Advisory cost: count tile re-reads with the real operand itemsizes.
        x_sz = jnp.dtype(xk.dtype).itemsize
        w_sz = jnp.dtype(self.wT.dtype).itemsize
        o_sz = jnp.dtype(out_dtype).itemsize
        cost = pl.CostEstimate(
            flops=2 * Mp * Kp * Np,
            transcendentals=0,
            bytes_accessed=(Mp * Kp * x_sz * (Np // tn)      # x re-streamed per N tile
                            + Kp * Np * w_sz * (Mp // tm)    # w re-streamed per M tile
                            + Np * 4 * (Mp // tm)            # bias
                            + Mp * Np * o_sz),               # output
        )

        out = pl.pallas_call(
            kernel,
            out_shape=jax.ShapeDtypeStruct((Mp, Np), out_dtype),
            grid_spec=pltpu.PrefetchScalarGridSpec(
                num_scalar_prefetch=0,
                grid=grid,
                in_specs=[
                    pl.BlockSpec((tm, tk), lambda i, j, k: (i, k)),   # x
                    pl.BlockSpec((tk, tn), lambda i, j, k: (k, j)),   # W^T (K, N)
                    pl.BlockSpec((1, tn), lambda i, j, k: (0, j)),    # bias row
                ],
                out_specs=pl.BlockSpec((tm, tn), lambda i, j, k: (i, j)),
                scratch_shapes=scratch,
            ),
            compiler_params=pltpu.CompilerParams(
                dimension_semantics=("parallel", "parallel", "arbitrary"),
                # Budgeted against v7x's 64 MiB physical VMEM; default bf16
                # tiles (512/512/1024) use ~7 MiB double-buffered.
                vmem_limit_bytes=48 * 1024 * 1024,
            ),
            cost_estimate=cost,
        )(xk, self.wT, self.b)

        return out[:B, :self.N]


if __name__ == "__main__":
    # Small shapes consistent with the module; exercise padding + tiling.
    B, input_dim, output_dim = 16, 288, 144

    key = jax.random.PRNGKey(0)
    kx, kw, kb = jax.random.split(key, 3)

    x = jax.random.normal(kx, (B, input_dim), dtype=jnp.float32)
    bound = 1.0 / (input_dim ** 0.5)
    weight = jax.random.uniform(kw, (output_dim, input_dim), jnp.float32,
                                minval=-bound, maxval=bound)
    bias = jax.random.uniform(kb, (output_dim,), jnp.float32,
                              minval=-bound, maxval=bound)

    ref = jnp.maximum(x, 0.0) @ weight.T + bias

    # 1) Exact-semantics validation path: f32 operands, single K step, no scratch.
    mod_f32 = LateFusionPallas(weight, bias, compute_dtype=jnp.float32)
    out_f32 = jax.block_until_ready(mod_f32(x))
    assert out_f32.shape == (B, output_dim)
    assert jnp.allclose(out_f32, ref, atol=1e-5, rtol=1e-5)

    # 2) Default performance path: bf16 operands streamed from HBM, f32 accumulation.
    mod_bf16 = LateFusionPallas(weight, bias)
    out_bf16 = jax.block_until_ready(mod_bf16(x))
    assert out_bf16.shape == (B, output_dim)
    assert jnp.allclose(out_bf16, ref, atol=2e-2, rtol=2e-2)

    # 3) Small tiles force a multi-step K reduction; f32 output exercises the
    #    accumulate-directly-into-output kernel (no scratch).
    mod_small = LateFusionPallas(weight, bias, tn=128, tk=128)
    out_small = jax.block_until_ready(mod_small(x, tm=8))
    assert out_small.shape == (B, output_dim)
    assert jnp.allclose(out_small, ref, atol=2e-2, rtol=2e-2)

    # 4) bf16 activations + multi-step K exercises the f32-scratch kernel
    #    (output dtype follows the input dtype, here bf16).
    out_small_bf16 = jax.block_until_ready(mod_small(x.astype(jnp.bfloat16), tm=8))
    assert out_small_bf16.shape == (B, output_dim)
    assert jnp.allclose(out_small_bf16.astype(jnp.float32), ref,
                        atol=3e-2, rtol=3e-2)

    print("KERNEL_OK")
</pallas_src>

<mosaic_0001>
module attributes {stable_mosaic.version = 11 : i64} {
  func.func @_single_step_kernel(%arg0: i32, %arg1: i32, %arg2: i32, %arg3: memref<16x384xf32, #tpu.memory_space<vmem>>, %arg4: memref<384x128xf32, #tpu.memory_space<vmem>>, %arg5: memref<1x128xf32, #tpu.memory_space<vmem>>, %arg6: memref<16x128xf32, #tpu.memory_space<vmem>>) attributes {dimension_semantics = [#tpu.dimension_semantics<parallel>, #tpu.dimension_semantics<parallel>, #tpu.dimension_semantics<arbitrary>], iteration_bounds = array<i64: 1, 2, 1>, scalar_prefetch = 0 : i64, scratch_operands = 0 : i64, tpu.core_type = #tpu.core_type<tc>, window_params = [{transform_indices = @transform_0, window_bounds = array<i64: 16, 384>}, {transform_indices = @transform_1, window_bounds = array<i64: 384, 128>}, {transform_indices = @transform_2, window_bounds = array<i64: 1, 128>}, {transform_indices = @transform_3, window_bounds = array<i64: 16, 128>}]} {
    %c0 = arith.constant 0 : index
    %c0_0 = arith.constant 0 : index
    %0 = vector.load %arg3[%c0, %c0_0] : memref<16x384xf32, #tpu.memory_space<vmem>>, vector<16x384xf32>
    %cst = arith.constant 0.000000e+00 : f32
    %1 = vector.broadcast %cst : f32 to vector<16x384xf32>
    %2 = arith.maximumf %0, %1 : vector<16x384xf32>
    %c0_1 = arith.constant 0 : index
    %c0_2 = arith.constant 0 : index
    %3 = vector.load %arg4[%c0_1, %c0_2] : memref<384x128xf32, #tpu.memory_space<vmem>>, vector<384x128xf32>
    %cst_3 = arith.constant dense<0.000000e+00> : vector<16x128xf32>
    %4 = tpu.matmul %2, %3, %cst_3 {dimension_numbers = #tpu.dot_dimension_numbers<[1], [0], [0], [1], [0, 0, 1, 1], [], []>} : vector<16x384xf32>, vector<384x128xf32>, vector<16x128xf32> -> vector<16x128xf32>
    %c0_4 = arith.constant 0 : index
    %c0_5 = arith.constant 0 : index
    %5 = vector.load %arg5[%c0_4, %c0_5] : memref<1x128xf32, #tpu.memory_space<vmem>>, vector<1x128xf32>
    %6 = vector.broadcast %5 : vector<1x128xf32> to vector<16x128xf32>
    %7 = arith.addf %4, %6 : vector<16x128xf32>
    %c0_6 = arith.constant 0 : index
    %c0_7 = arith.constant 0 : index
    %8 = vector.load %arg6[%c0_6, %c0_7] : memref<16x128xf32, #tpu.memory_space<vmem>>, vector<16x128xf32>
    tpu.vector_store %arg6[%c0_6, %c0_7], %7 {strides = array<i32>} : memref<16x128xf32, #tpu.memory_space<vmem>>, vector<16x128xf32>,
    return
  }
  func.func @transform_0(%arg0: i32, %arg1: i32, %arg2: i32) -> (i32, i32) {
    %c0_i32 = arith.constant 0 : i32
    return %arg0, %arg2 : i32, i32
  }
  func.func @transform_1(%arg0: i32, %arg1: i32, %arg2: i32) -> (i32, i32) {
    %c0_i32 = arith.constant 0 : i32
    return %arg2, %arg1 : i32, i32
  }
  func.func @transform_2(%arg0: i32, %arg1: i32, %arg2: i32) -> (i32, i32) {
    %c0_i32 = arith.constant 0 : i32
    %c0_i32_0 = arith.constant 0 : i32
    return %c0_i32, %arg1 : i32, i32
  }
  func.func @transform_3(%arg0: i32, %arg1: i32, %arg2: i32) -> (i32, i32) {
    %c0_i32 = arith.constant 0 : i32
    return %arg0, %arg1 : i32, i32
  }
}

</mosaic_0001>

<bundles_post_ra>
// kernel: tpu_custom_call.1
= control target key start
LH: loop header
LB: loop body
LE: loop exit
PB: predicated region body
PF: predicated region fallthrough
CT: control target
= control target key end

     0   :  { %8 = vsyncpa [#allocation3], 0  ;;  %s1199_s0 = inlined_call_operand.hbm [shape: f32[16,384], index: 0, kind: input, shape index: {}]   ;;  %s1200_s1 = inlined_call_operand.hbm [shape: f32[384,256], index: 1, kind: input, shape index: {}]   ;;  %s1201_s2 = inlined_call_operand.vmem [shape: f32[1,256], index: 2, kind: input, shape index: {}]   ;;  %s1202_s3 = inlined_call_operand.hbm [shape: f32[16,256], index: 3, kind: output, shape index: {}]  }
   0x1   :  { %9 = vsyncpa [#allocation6], 0 }
   0x2   :  { %11 = vsyncpa [#allocation6 + $0x1], 0 }
   0x3   :  { %12 = vsyncpa [#allocation4], 0 }
   0x4   :  { %14 = vsyncpa [#allocation4 + $0x1], 0  ;;  %s968_s12 = smov 0   ;;  %s970_s13 = smov 0  }
   0x5   :  { %s972_s14 = smov 0   ;;  %s974_s15 = smov 0  }
   0x6   :  { %s976_s16 = smov 0   ;;  %s978_s17 = smov 0  }
   0x7 LB: > { %1208 = sst [smem:[#allocation11_spill]] %s935_s17  ;;  %s609_s18 = sadd.s32 4294967295, %s935_s17   ;;  %s935_s17 = sphi %s978_s17, %s20_s17   ;;  %s931_s16 = sphi %s976_s16, %s1228_s16   ;;  %s927_s15 = sphi %s974_s15, %s1227_s15   ;;  %s923_s14 = sphi %s972_s14, %s1226_s14   ;;  %s919_s13 = sphi %s970_s13, %s1225_s13   ;;  %s915_s12 = sphi %s968_s12, %s1224_s12  }
   0x8   : > { %s610_s19 = sadd.s32 4294967294, %s935_s17   ;;  %p83_p0 = scmp.ne.s32.totalorder %s923_s14, %s919_s13 }
   0x9   : > { %p84_p1 = scmp.eq.s32.totalorder %s935_s17, 0  ;;  %p89_p2 = scmp.ne.s32.totalorder %s919_s13, %s915_s12 }
   0xa   : > { %p1005_p3 = scmp.eq.s32.totalorder %s609_s18, 0  ;;  %p141_p5 = scmp.eq.s32.totalorder %s609_s18, 1 }
   0xb   : > { %p1009_p4 = por %p84_p1, %p83_p0  ;;  %p147_p7 = scmp.eq.s32.totalorder %s610_s19, 1 }
   0xc   : > { %p1015_p6 = por %p1005_p3, %p89_p2  ;;  %p1019_p8 = por %p141_p5, %p83_p0 }
   0xd   : > { %p611_p9 = scmp.ge.s32.totalorder %s935_s17, 1  ;;  %p1024_p10 = por %p147_p7, %p89_p2 }
   0xe   : > { %s1211_s22 = scalar_select %p1015_p6, 1, 0 }
   0xf   : > { %s1212_s23 = scalar_select %p1019_p8, 1, 0 }
  0x10   : > { %s1213_s24 = scalar_select %p1024_p10, 1, 0 }
  0x11   : > { %p154_p11 = scmp.lt.s32.totalorder %s935_s17, 3  ;;  %s937_s26 = smov [#allocation2]  }
  0x12   : > { %1214 = sst [smem:[#allocation12_spill]] %s1213_s24  ;;  %s172_s27 = sshll.u32 %s937_s26, 4  ;;  %s173_s27 = int_to_ptr.vmem [resolvable:$true] %s172_s27 }
  0x13   : > { %p1029_p12 = pnand %p611_p9, %p154_p11  ;;  %p737_p1 = scmp.lt.s32.totalorder %s935_s17, 2 }
  0x14   : > { %s35_s30 = sadd.s32 1, %s931_s16  ;;  %s808_s4 = scalar_lea.vmem %s173_s27, 768 }
  0x15   : > { %p724_p13 = pneg %p1029_p12  ;;  %p1045_p2 = pnand %p737_p1, %p1009_p4 }
  0x16   : > { %p809_p9 = scmp.ne.s32.totalorder %s173_s27, %s808_s4  ;;  %p816_p0 = scmp.lt.s32.totalorder %s173_s27, %s173_s27 }
  0x17   : > { %p1039_p5 = pnand %p724_p13, %p1005_p3  ;;  %p817_p8 = scmp.lt.s32.totalorder %s808_s4, %s808_s4 }
  0x19   : > { %p799_p7 = pneg %p1039_p5  ;;  %p818_p6 = por %p817_p8, %p816_p0 }
  0x1b   : > { %p811_p11 = pnand %p809_p9, %p799_p7 }
  0x1d   : > { %p812_p10 = pneg %p811_p11 }
  0x1f   : > { %p819_p13 = pnand %p818_p6, %p812_p10 }
  0x21   : > { %822 = shalt.err (!%p819_p13)
}
  0x22   : > { %s938_s5 = smov 384   ;;  %s939_s6 = smov 24  }
  0x23   : > { %727 = dma.hbm_to_vmem [thread:$0]  (!%p1039_p5), %s1199_s0, 768, %s173_s27, [#allocation3], %s938_s5, %s938_s5, %s939_s6  }
  0x24   : > { %p37_p4 = scmp.ge.s32.totalorder %s35_s30, 2  ;;  %s76_s9 = sadd.s32 1, %s923_s14 }
  0x25   : > { %s186_s10 = sand.u32 1, %s923_s14   ;;  %s614_s19 = sshll.u32 %s931_s16, 7 }
  0x26   : > { %s1230_s30 = smov (%p37_p4, %s35_s30), 0  ;;  %s714_s11 = smul.u32 384, %s186_s10 }
  0x27   : > { %s72_s18 = ssub.s32 %s931_s16, %s1230_s30  ;;  %s198_s4 = scalar_lea.hbm %s1200_s1, %s614_s19 }
  0x28   : > { %p74_p6 = scmp.eq.s32.totalorder %s72_s18, 0  ;;  %s190_s28 = scalar_lea.vmem [#allocation5], %s714_s11 }
  0x29   : > { %s199_s17 = sshll.u32 %s190_s28, 4  ;;  %s187_s27 = scalar_lea.sflag [#allocation6], %s186_s10  ;;  %s200_s17 = int_to_ptr.vmem [resolvable:$true] %s199_s17 }
  0x2a   : > { %s1068_s24 = scalar_select %p74_p6, %s923_s14, %s76_s9  }
  0x2b   : > { %p825_p8 = pneg %p1045_p2  ;;  %s836_s5 = scalar_lea.vmem %s200_s17, 6144 }
  0x2c   : > { %p837_p10 = scmp.ne.s32.totalorder %s200_s17, %s836_s5  ;;  %s940_s6 = smov [#allocation5]  }
  0x2d   : > { %s841_s7 = sshll.u32 %s940_s6, 4  ;;  %s842_s7 = int_to_ptr.vmem [resolvable:$false] %s841_s7 }
  0x2e   : > { %p839_p0 = pnand %p837_p10, %p825_p8  ;;  %s843_s8 = scalar_lea.vmem %s842_s7, 12288 }
  0x2f   : > { %p844_p5 = scmp.lt.s32.totalorder %s200_s17, %s842_s7  ;;  %p845_p7 = scmp.lt.s32.totalorder %s843_s8, %s836_s5 }
  0x30   : > { %p840_p1 = pneg %p839_p0 }
  0x31   : > { %p846_p9 = por %p845_p7, %p844_p5 }
  0x33   : > { %p847_p11 = pnand %p846_p9, %p840_p1 }
  0x35   : > { %850 = shalt.err (!%p847_p11)
}
  0x36   : > { %s941_s11 = smov 256   ;;  %s942_s9 = smov 128  }
  0x37   : > { %s943_s18 = smov 8   ;;  %217 = sbr.rel (%p1029_p12) target bundleno = 319 (0x13f), region = 32 }
  0x38   : > { %731 = dma.hbm_to_vmem [thread:$0]  (!%p1045_p2), %s198_s4, 6144, %s200_s17, %s187_s27, %s941_s11, %s942_s9, %s943_s18  }
  0x3c   : > { %902 = dma.done.wait (%p1005_p3), [#allocation3], 768  }
  0x3d   : > { %904 = vsyncadd (%p1005_p3), [#allocation3], 4294966528  ;;  %s1081_s10 = sand.u32 1, %s919_s13   ;;  %p1218_p2 = scmp.ne.s32.totalorder %s1211_s22, 0 }
  0x3e   : > { %s715_s19 = smul.u32 384, %s1081_s10  ;;  %s224_s21 = scalar_lea.sflag [#allocation6], %s1081_s10 }
  0x40   : > { %s1085_s26 = scalar_lea.vmem [#allocation5], %s715_s19 }
  0x41   : > { %906 = dma.done.wait (%p1218_p2), %s224_s21, 6144  }
  0x42   : > { %908 = vsyncadd (%p1218_p2), %s224_s21, 4294961152  ;;  %v303_v0 = vld [vmem:[%s1085_s26 + $0xf8] sm:$0xff]  ;;  %v302_v2 = vld [vmem:[%s1085_s26 + $0xf0] sm:$0xff]  ;;  %p256_p3 = scmp.lt.s32.totalorder %s927_s15, 1  ;;  %s617_s29 = sshll.u32 %s1081_s10, 4 }
  0x43   : > { %v287_v1 = vld [vmem:[%s1085_s26 + $0x78] sm:$0xff]  ;;  %623 = vmatprep.subr.mxu0 %v303_v0  ;;  %v286_v3 = vld [vmem:[%s1085_s26 + $0x70] sm:$0xff]  ;;  %v301_v5 = vld [vmem:[%s1085_s26 + $0xe8] sm:$0xff]  ;;  %s252_s4 = scalar_lea.vmem [#allocation7], %s617_s29  ;;  %s620_s27 = sshll.u32 %s927_s15, 7 }
  0x44   : > { %v319_v4 = vld [vmem:[%s1085_s26 + $0x178] sm:$0xff]  ;;  %624 = vmatpush3.msra.mxu0 %v287_v1  ;;  %v318_v6 = vld [vmem:[%s1085_s26 + $0x170] sm:$0xff]  ;;  %v285_v7 = vld [vmem:[%s1085_s26 + $0x68] sm:$0xff]  ;;  %s257_s17 = scalar_select %p256_p3, %s927_s15, 1 }
  0x45   : > { %679 = vmatprep.subr.mxu1 %v319_v4  ;;  %625 = vmatprep.subr.mxu0 %v302_v2  ;;  %v317_v8 = vld [vmem:[%s1085_s26 + $0x168] sm:$0xff]  ;;  %v300_v9 = vld [vmem:[%s1085_s26 + $0xe0] sm:$0xff]  ;;  %v299_v12 = vld [vmem:[%s1085_s26 + $0xd8] sm:$0xff]  ;;  %s495_s28 = sshll.u32 %s252_s4, 4  ;;  %s1151_s7 = scalar_lea.hbm %s1202_s3, %s620_s27  ;;  %s1146_s28 = int_to_ptr.vmem [resolvable:$true] %s495_s28 }
  0x46   : > { %680 = vmatpush3.msra.mxu1 %v319_v4  ;;  %626 = vmatpush3.msra.mxu0 %v286_v3  ;;  %v284_v10 = vld [vmem:[%s1085_s26 + $0x60] sm:$0xff]  ;;  %v283_v13 = vld [vmem:[%s1085_s26 + $0x58] sm:$0xff]  ;;  %v298_v15 = vld [vmem:[%s1085_s26 + $0xd0] sm:$0xff]  ;;  %s258_s25 = scalar_lea.vmem %s1201_s2, %s257_s17  ;;  %s480_s8 = scalar_lea.sflag [#allocation4], %s1081_s10 }
  0x47   : > { %681 = vmatprep.subr.mxu1 %v318_v6  ;;  %627 = vmatprep.subr.mxu0 %v301_v5  ;;  %v316_v11 = vld [vmem:[%s1085_s26 + $0x160] sm:$0xff]  ;;  %v315_v14 = vld [vmem:[%s1085_s26 + $0x158] sm:$0xff]  ;;  %v282_v16 = vld [vmem:[%s1085_s26 + $0x50] sm:$0xff]  ;;  %s851_s11 = scalar_lea.vmem %s1146_s28, 256  ;;  %p1219_p13 = scmp.ne.s32.totalorder %s1212_s23, 0 }
  0x48   : > { %682 = vmatpush3.msra.mxu1 %v318_v6  ;;  %628 = vmatpush3.msra.mxu0 %v285_v7  ;;  %v314_v17 = vld [vmem:[%s1085_s26 + $0x150] sm:$0xff]  ;;  %v297_v18 = vld [vmem:[%s1085_s26 + $0xc8] sm:$0xff]  ;;  %v296_v21 = vld [vmem:[%s1085_s26 + $0xc0] sm:$0xff]  ;;  %p852_p12 = scmp.ne.s32.totalorder %s1146_s28, %s851_s11  ;;  %s944_s15 = smov [#allocation7]  }
  0x49   : > { %683 = vmatprep.subr.mxu1 %v317_v8  ;;  %629 = vmatprep.subr.mxu0 %v300_v9  ;;  %v281_v19 = vld [vmem:[%s1085_s26 + $0x48] sm:$0xff]  ;;  %v280_v22 = vld [vmem:[%s1085_s26 + $0x40] sm:$0xff]  ;;  %v295_v24 = vld [vmem:[%s1085_s26 + $0xb8] sm:$0xff]  ;;  %s855_s9 = sshll.u32 %s944_s15, 4  ;;  %s856_s9 = int_to_ptr.vmem [resolvable:$false] %s855_s9 }
  0x4a   : > { %684 = vmatpush3.msra.mxu1 %v317_v8  ;;  %630 = vmatpush3.msra.mxu0 %v284_v10  ;;  %v313_v20 = vld [vmem:[%s1085_s26 + $0x148] sm:$0xff]  ;;  %v312_v23 = vld [vmem:[%s1085_s26 + $0x140] sm:$0xff]  ;;  %v279_v25 = vld [vmem:[%s1085_s26 + $0x38] sm:$0xff]  ;;  %p853_p4 = pnand %p852_p12, %p1219_p13  ;;  %s857_s18 = scalar_lea.vmem %s856_s9, 512 }
  0x4b   : > { %685 = vmatprep.subr.mxu1 %v316_v11  ;;  %631 = vmatprep.subr.mxu0 %v299_v12  ;;  %v311_v26 = vld [vmem:[%s1085_s26 + $0x138] sm:$0xff]  ;;  %v294_v27 = vld [vmem:[%s1085_s26 + $0xb0] sm:$0xff]  ;;  %v293_v30 = vld [vmem:[%s1085_s26 + $0xa8] sm:$0xff]  ;;  %p858_p8 = scmp.lt.s32.totalorder %s1146_s28, %s856_s9  ;;  %p859_p10 = scmp.lt.s32.totalorder %s857_s18, %s851_s11 }
  0x4c   : > { %686 = vmatpush3.msra.mxu1 %v316_v11  ;;  %632 = vmatpush3.msra.mxu0 %v283_v13  ;;  %v278_v28 = vld [vmem:[%s1085_s26 + $0x30] sm:$0xff]  ;;  %v277_v31 = vld [vmem:[%s1085_s26 + $0x28] sm:$0xff]  ;;  %v292_v33 = vld [vmem:[%s1085_s26 + $0xa0] sm:$0xff]  ;;  %p854_p6 = pneg %p853_p4 }
  0x4d   : > { %687 = vmatprep.subr.mxu1 %v315_v14  ;;  %633 = vmatprep.subr.mxu0 %v298_v15  ;;  %v310_v29 = vld [vmem:[%s1085_s26 + $0x130] sm:$0xff]  ;;  %v309_v32 = vld [vmem:[%s1085_s26 + $0x128] sm:$0xff]  ;;  %v276_v34 = vld [vmem:[%s1085_s26 + $0x20] sm:$0xff]  ;;  %p860_p0 = por %p859_p10, %p858_p8 }
  0x4e   : > { %688 = vmatpush3.msra.mxu1 %v315_v14  ;;  %634 = vmatpush3.msra.mxu0 %v282_v16  ;;  %v308_v35 = vld [vmem:[%s1085_s26 + $0x120] sm:$0xff]  ;;  %v291_v36 = vld [vmem:[%s1085_s26 + $0x98] sm:$0xff]  ;;  %v290_v40 = vld [vmem:[%s1085_s26 + $0x90] sm:$0xff] }
  0x4f   : > { %689 = vmatprep.subr.mxu1 %v314_v17  ;;  %635 = vmatprep.subr.mxu0 %v297_v18  ;;  %v261_v37 = vld [vmem:[#allocation2 + $0x8] sm:$0xff]  ;;  %v274_v41 = vld [vmem:[%s1085_s26 + $0x10] sm:$0xff]  ;;  %v289_v44 = vld [vmem:[%s1085_s26 + $0x88] sm:$0xff]  ;;  %p861_p1 = pnand %p860_p0, %p854_p6 }
  0x50   : > { %690 = vmatpush3.msra.mxu1 %v314_v17  ;;  %636 = vmatpush3.msra.mxu0 %v281_v19  ;;  %v275_v38 = vld [vmem:[%s1085_s26 + $0x18] sm:$0xff]  ;;  %v306_v42 = vld [vmem:[%s1085_s26 + $0x110] sm:$0xff]  ;;  %v267_v43 = vmax.f32 %v261_v37, 0.0  ;;  %v273_v46 = vld [vmem:[%s1085_s26 + $0x8] sm:$0xff] }
  0x51   : > { %691 = vmatprep.subr.mxu1 %v313_v20  ;;  %637 = vmatprep.subr.mxu0 %v296_v21  ;;  %v307_v39 = vld [vmem:[%s1085_s26 + $0x118] sm:$0xff]  ;;  %v260_v45 = vld [vmem:[#allocation2] sm:$0xff]  ;;  %v288_v48 = vld [vmem:[%s1085_s26 + $0x80] sm:$0xff] }
  0x52   : > { %692 = vmatpush3.msra.mxu1 %v313_v20  ;;  %638 = vmatpush3.msra.mxu0 %v280_v22  ;;  %v264_v47 = vld [vmem:[#allocation2 + $0x20] sm:$0xff]  ;;  %v305_v49 = vld [vmem:[%s1085_s26 + $0x108] sm:$0xff]  ;;  %v262_v50 = vld [vmem:[#allocation2 + $0x10] sm:$0xff]  ;;  %v266_v52 = vmax.f32 %v260_v45, 0.0 }
  0x53   : > { %693 = vmatprep.subr.mxu1 %v312_v23  ;;  %639 = vmatprep.subr.mxu0 %v295_v24  ;;  %v272_v51 = vld [vmem:[%s1085_s26] sm:$0xff]  ;;  %v265_v53 = vld [vmem:[#allocation2 + $0x28] sm:$0xff]  ;;  %v270_v55 = vmax.f32 %v264_v47, 0.0  ;;  %v263_v56 = vld [vmem:[#allocation2 + $0x18] sm:$0xff]  ;;  %v268_v57 = vmax.f32 %v262_v50, 0.0 }
  0x54   : > { %694 = vmatpush3.msra.mxu1 %v312_v23  ;;  %640 = vmatpush3.msra.mxu0 %v279_v25  ;;  %v304_v54 = vld [vmem:[%s1085_s26 + $0x100] sm:$0xff]  ;;  %v271_v58 = vmax.f32 %v265_v53, 0.0  ;;  %v269_v59 = vmax.f32 %v263_v56, 0.0  ;;  %v618_v62 = vld [vmem:[%s258_s25] ss:$0 sm:$0xff] }
  0x55   : > { %695 = vmatprep.subr.mxu1 %v311_v26  ;;  %641 = vmatprep.subr.mxu0 %v294_v27 }
  0x56   : > { %696 = vmatpush3.msra.mxu1 %v311_v26  ;;  %642 = vmatpush3.msra.mxu0 %v278_v28 }
  0x57   : > { %697 = vmatprep.subr.mxu1 %v310_v29  ;;  %643 = vmatprep.subr.mxu0 %v293_v30 }
  0x58   : > { %698 = vmatpush3.msra.mxu1 %v310_v29  ;;  %644 = vmatpush3.msra.mxu0 %v277_v31 }
  0x59   : > { %699 = vmatprep.subr.mxu1 %v309_v32  ;;  %645 = vmatprep.subr.mxu0 %v292_v33 }
  0x5a   : > { %700 = vmatpush3.msra.mxu1 %v309_v32  ;;  %646 = vmatpush3.msra.mxu0 %v276_v34 }
  0x5b   : > { %701 = vmatprep.subr.mxu1 %v308_v35  ;;  %647 = vmatprep.subr.mxu0 %v291_v36 }
  0x5c   : > { %702 = vmatpush3.msra.mxu1 %v308_v35  ;;  %648 = vmatpush3.msra.mxu0 %v275_v38 }
  0x5d   : > { %703 = vmatprep.subr.mxu1 %v307_v39  ;;  %649 = vmatprep.subr.mxu0 %v290_v40 }
  0x5e   : > { %704 = vmatpush3.msra.mxu1 %v307_v39  ;;  %650 = vmatpush3.msra.mxu0 %v274_v41 }
  0x5f   : > { %705 = vmatprep.subr.mxu1 %v306_v42  ;;  %651 = vmatprep.subr.mxu0 %v289_v44 }
  0x60   : > { %391 = vmatprep.mubr.f32.mxu0 %v267_v43  ;;  %652 = vmatpush3.msra.mxu0 %v273_v46 }
  0x61   : > { %706 = vmatpush3.msra.mxu1 %v306_v42  ;;  %653 = vmatprep.subr.mxu0 %v288_v48 }
  0x62   : > { %707 = vmatprep.subr.mxu1 %v305_v49  ;;  %654 = vmatpush3.msra.mxu0 %v272_v51 }
  0x63   : > { %708 = vmatpush3.msra.mxu1 %v305_v49  ;;  %392 = vmatmul.mubr.f32.vlgmr.msra.gmra.mxu0 %v266_v52 }
  0x64   : > { %709 = vmatprep.subr.mxu1 %v304_v54  ;;  %396 = vmatprep.mubr.f32.mxu0 %v270_v55 }
  0x65   : > { %710 = vmatpush3.msra.mxu1 %v304_v54  ;;  %711 = vmatprep.mubr.f32.mxu1 %v268_v57 }
  0x66   : > { %712 = vmatmul.mubr.f32.vlgmr.msra.gmra.mxu1 %v271_v58 }
  0x67   : > { %397 = vmatmul.mubr.f32.gmra.mxu0 %v269_v59 }
 0x123   : > { %v655_v60 = vpop.f32.mrf.mxu0 }
 0x125   : > { %v656_v61 = vpop.f32.mrf.mxu0 }
 0x126   : > { %v657_v63 = vadd.f32 %v656_v61, %v655_v60  ;;  %v713_v0 = vpop.f32.mrf.mxu1 }
 0x127   : > { %v658_v1 = vpop.f32.mrf.mxu0 }
 0x128   : > { %v394_v2 = vadd.f32 %v657_v63, %v618_v62  ;;  %v468_v3 = vpop.f32.mrf.mxu1 }
 0x129   : > { %v659_v4 = vpop.f32.mrf.mxu0 }
 0x12a   : > { %v660_v5 = vadd.f32 %v659_v4, %v658_v1  ;;  %v469_v6 = vadd.f32 %v468_v3, %v394_v2 }
 0x12c   : > { %v399_v7 = vadd.f32 %v660_v5, %v618_v62  ;;  %477 = vst [vmem:[%s252_s4] sm:$0xff] %v469_v6 }
 0x12e   : > { %v474_v8 = vadd.f32 %v713_v0, %v399_v7 }
 0x130   : > { %478 = vst [vmem:[%s252_s4 + $0x8] sm:$0xff] %v474_v8 }
 0x131   : > { %864 = shalt.err (!%p861_p1)
}
 0x132   : > { %s865_s19 = scalar_lea.hbm %s1151_s7, 256  ;;  %s869_s17 = scalar_lea.hbm %s1202_s3, 512 }
 0x133   : > { %p866_p5 = scmp.ne.s32.totalorder %s1151_s7, %s865_s19  ;;  %p870_p11 = scmp.lt.s32.totalorder %s1151_s7, %s1202_s3 }
 0x134   : > { %p871_p2 = scmp.lt.s32.totalorder %s869_s17, %s865_s19 }
 0x135   : > { %p867_p7 = pnand %p866_p5, %p1219_p13 }
 0x136   : > { %p872_p3 = por %p871_p2, %p870_p11 }
 0x137   : > { %p868_p9 = pneg %p867_p7 }
 0x139   : > { %p873_p12 = pnand %p872_p3, %p868_p9 }
 0x13b   : > { %876 = shalt.err (!%p873_p12)
}
 0x13c   : > { %s945_s25 = smov 128   ;;  %s946_s29 = smov 256  }
 0x13d   : > { %s947_s4 = smov 8  }
 0x13e   : > { %722 = dma.vmem_to_hbm [thread:$0]  (%p1219_p13), %s1146_s28, 256, %s1151_s7, %s480_s8, %s945_s25, %s946_s29, %s947_s4  }
 0x13f PF: > { %s1220_s27 = sld [smem:[#allocation12_spill]]  ;;  %s510_s6 = sand.u32 1, %s915_s12  }
 0x140   : > { %s1221_s5 = sld [smem:[#allocation11_spill]]  ;;  %s511_s11 = scalar_lea.sflag [#allocation4], %s510_s6 }
 0x145   : > { %p1222_p4 = scmp.ne.s32.totalorder %s1220_s27, 0 }
 0x146   : > { %p1223_p6 = scmp.ge.s32.totalorder %s1221_s5, 2 }
 0x148   : > { %p733_p8 = pnand %p1223_p6, %p1222_p4 }
 0x14a   : > { %p734_p10 = pneg %p733_p8 }
 0x14c   : > { %910 = dma.done.wait (%p734_p10), %s511_s11, 256  }
 0x14d   : > { %912 = vsyncadd (%p734_p10), %s511_s11, 4294967040  ;;  %s20_s17 = sadd.s32 1, %s1221_s5   ;;  %s1224_s12 = smov %s919_s13 }
 0x14e   : > { %p17_p0 = scmp.ge.s32.totalorder %s20_s17, 4   ;;  %s1225_s13 = smov %s923_s14 }
 0x14f   : > { %s1226_s14 = smov %s1068_s24  ;;  %s1227_s15 = smov %s931_s16 }
 0x150   : > { %s1228_s16 = smov %s1230_s30  ;;  %19 = sbr.rel (!%p17_p0) target bundleno = 7 (0x7), region = 86 }
 0x155   :  { %516 = vsyncpa [#allocation3], 1 }
 0x156   :  { %518 = vsyncpa [#allocation3 + $0x1], 1 }
 0x157   :  { %519 = vsyncpa [#allocation6], 1 }
 0x158   :  { %521 = vsyncpa [#allocation6 + $0x1], 1 }
 0x159   :  { %522 = vsyncpa [#allocation4], 1 }
 0x15a   :  { %524 = vsyncpa [#allocation4 + $0x1], 1 }

</bundles_post_ra>
